<compile_context>
chip_gen: v5e
topology: v5e:2x2
jax: 0.10.0
libtpu: 0.0.40
codegen_flags: <defaults>
</compile_context>

<pallas_src>
import functools

import jax
import jax.numpy as jnp
from jax.experimental import pallas as pl
from jax.experimental.pallas import tpu as pltpu

NEG_SLOPE = 0.01  # PyTorch LeakyReLU default


def _leaky_relu(x):
    return jnp.where(x >= 0, x, NEG_SLOPE * x)


def _dwsep_kernel(x_ref, dww_ref, pww_ref, b1_ref, b2_ref, out_ref, xbuf_ref,
                  *, kernel_size, pad):
    """One grid step == `nb` batch elements.

    x_ref   : (nb, Cin, L)            unpadded input
    dww_ref : (Cin, K)                depthwise weights, BN1 scale folded in
    pww_ref : (Cout, Cin)             pointwise weights, BN2 scale folded in
    b1_ref  : (Cin, 1)                folded BN1 bias
    b2_ref  : (Cout, 1)               folded BN2 bias
    out_ref : (nb, Cout, L)
    xbuf_ref: (nb, Cin, L + 2*pad)    VMEM scratch holding the halo'd input
    """
    nb, cin, L = x_ref.shape
    K = kernel_size

    # Build the zero-padded input in VMEM (halo handled on-chip, no HBM copy).
    if pad > 0:
        zeros_edge = jnp.zeros((nb, cin, pad), jnp.float32)
        xbuf_ref[:, :, 0:pad] = zeros_edge
        xbuf_ref[:, :, pad + L:pad + L + pad] = zeros_edge
    xbuf_ref[:, :, pad:pad + L] = x_ref[...].astype(jnp.float32)

    xp = xbuf_ref[...]                       # (nb, Cin, L + 2*pad), f32
    dww = dww_ref[...]                       # (Cin, K), BN1 scale pre-folded

    # Depthwise conv: K shifted multiply-accumulates on the VPU.
    # NOTE: lane slices at offsets 1..K-1 are not (8,128)-aligned; they are
    # kept as slices (VMEM-resident data) because pltpu.roll is not
    # guaranteed to lower for lane widths < 128.
    acc = jnp.zeros((nb, cin, L), jnp.float32)
    for k in range(K):                       # static unroll
        acc = acc + xp[:, :, k:k + L] * dww[:, k:k + 1][None, :, :]

    # BN1 bias (scale already folded into weights) + LeakyReLU.
    y1 = _leaky_relu(acc + b1_ref[...][None, :, :])

    # Pointwise 1x1 conv == channel matmul on the MXU, per packed batch elem.
    # (At tiny Cin/Cout the MXU is mostly idle; dot stays the simplest
    # correct mapping. Operands in model dtype, f32 accumulation.)
    pww = pww_ref[...]
    b2 = b2_ref[...]
    for b in range(nb):                      # static unroll, nb is small
        pw_b = jnp.dot(pww, y1[b].astype(pww.dtype),
                       preferred_element_type=jnp.float32)
        out_ref[b] = _leaky_relu(pw_b + b2).astype(out_ref.dtype)


def depthwise_separable_conv1d(x, dw_w, pw_w,
                               bn1_gamma, bn1_beta, bn1_mean, bn1_var,
                               bn2_gamma, bn2_beta, bn2_mean, bn2_var,
                               *, kernel_size=3, stride=1, eps=1e-5,
                               matmul_dtype=None, batch_block=None):
    assert stride == 1, "only stride=1 (module default) is implemented"
    assert kernel_size % 2 == 1, (
        "even kernel_size changes output length in PyTorch; only odd K supported")
    N, Cin, L = x.shape
    Cout = pw_w.shape[0]
    K = kernel_size
    pad = (K - 1) // 2

    # Fold BN running stats: scale into the conv weights, shift into a bias.
    inv1 = jax.lax.rsqrt(bn1_var.astype(jnp.float32) + eps) * bn1_gamma.astype(jnp.float32)
    inv2 = jax.lax.rsqrt(bn2_var.astype(jnp.float32) + eps) * bn2_gamma.astype(jnp.float32)
    dw_scaled = dw_w.astype(jnp.float32) * inv1[:, None]                 # (Cin, K)
    b1 = (bn1_beta.astype(jnp.float32)
          - bn1_mean.astype(jnp.float32) * inv1).reshape(Cin, 1)
    if matmul_dtype is None:
        matmul_dtype = x.dtype   # bf16 models feed the MXU bf16 automatically
    pw_scaled = (pw_w.astype(jnp.float32) * inv2[:, None]).astype(matmul_dtype)
    b2 = (bn2_beta.astype(jnp.float32)
          - bn2_mean.astype(jnp.float32) * inv2).reshape(Cout, 1)

    # Pack a few batch elements per grid step (amortize per-step overhead)
    # while keeping the double-buffered blocks comfortably small.
    if batch_block is None:
        per_batch_bytes = (Cin * (L + 2 * pad) + Cin * L + Cout * L) * 4
        batch_block = 1
        for cand in range(min(N, 8), 0, -1):
            if N % cand == 0 and cand * per_batch_bytes <= (4 << 20):
                batch_block = cand
                break
    nb = batch_block
    assert N % nb == 0

    itemsize = jnp.dtype(x.dtype).itemsize
    x_block_bytes = nb * Cin * L * itemsize
    o_block_bytes = nb * Cout * L * itemsize
    scratch_bytes = nb * Cin * (L + 2 * pad) * 4
    vmem_limit = int(min(100 << 20,
                         max(16 << 20,
                             3 * (x_block_bytes + o_block_bytes) + scratch_bytes)))

    kernel = functools.partial(_dwsep_kernel, kernel_size=K, pad=pad)

    return pl.pallas_call(
        kernel,
        out_shape=jax.ShapeDtypeStruct((N, Cout, L), x.dtype),
        grid_spec=pltpu.PrefetchScalarGridSpec(
            num_scalar_prefetch=0,
            grid=(N // nb,),
            in_specs=[
                pl.BlockSpec((nb, Cin, L), lambda n: (n, 0, 0)),
                pl.BlockSpec((Cin, K), lambda n: (0, 0)),
                pl.BlockSpec((Cout, Cin), lambda n: (0, 0)),
                pl.BlockSpec((Cin, 1), lambda n: (0, 0)),
                pl.BlockSpec((Cout, 1), lambda n: (0, 0)),
            ],
            out_specs=pl.BlockSpec((nb, Cout, L), lambda n: (n, 0, 0)),
            scratch_shapes=[pltpu.VMEM((nb, Cin, L + 2 * pad), jnp.float32)],
        ),
        compiler_params=pltpu.CompilerParams(
            dimension_semantics=("parallel",),
            vmem_limit_bytes=vmem_limit,
        ),
    )(x, dw_scaled, pw_scaled, b1, b2)


def _reference(x, dw_w, pw_w, s1, b1, s2, b2, K):
    # Pure-JAX reference (inference-mode BN folded into scale/bias).
    pad = (K - 1) // 2
    x_pad = jnp.pad(x, ((0, 0), (0, 0), (pad, pad)))
    L = x.shape[-1]
    dw = sum(x_pad[:, :, k:k + L] * dw_w[None, :, k:k + 1] for k in range(K))
    y1 = _leaky_relu(dw * s1[None, :, None] + b1[None, :, None])
    pw = jnp.einsum("oc,ncl->nol", pw_w, y1)
    return _leaky_relu(pw * s2[None, :, None] + b2[None, :, None])


if __name__ == "__main__":
    N, Cin, Cout, L, K = 2, 4, 8, 16, 3
    key = jax.random.PRNGKey(0)
    k1, k2, k3, k4, k5, k6, k7, k8, k9, k10, k11 = jax.random.split(key, 11)

    x = jax.random.normal(k1, (N, Cin, L), jnp.float32)
    # Conv1d(nin, nin, K, groups=nin, bias=False) weight: (nin, 1, K) -> (Cin, K)
    dw_w = jax.random.normal(k2, (Cin, K), jnp.float32) * 0.5
    # Conv1d(nin, nout, 1, bias=False) weight: (nout, nin, 1) -> (Cout, Cin)
    pw_w = jax.random.normal(k3, (Cout, Cin), jnp.float32) * 0.5
    # BatchNorm1d params (inference mode: running stats + affine)
    bn1_gamma = jax.random.uniform(k4, (Cin,), jnp.float32, 0.5, 1.5)
    bn1_beta = jax.random.normal(k5, (Cin,), jnp.float32) * 0.1
    bn1_mean = jax.random.normal(k6, (Cin,), jnp.float32) * 0.1
    bn1_var = jax.random.uniform(k7, (Cin,), jnp.float32, 0.5, 1.5)
    bn2_gamma = jax.random.uniform(k8, (Cout,), jnp.float32, 0.5, 1.5)
    bn2_beta = jax.random.normal(k9, (Cout,), jnp.float32) * 0.1
    bn2_mean = jax.random.normal(k10, (Cout,), jnp.float32) * 0.1
    bn2_var = jax.random.uniform(k11, (Cout,), jnp.float32, 0.5, 1.5)

    out = depthwise_separable_conv1d(
        x, dw_w, pw_w,
        bn1_gamma, bn1_beta, bn1_mean, bn1_var,
        bn2_gamma, bn2_beta, bn2_mean, bn2_var,
        kernel_size=K, stride=1)
    out = jax.block_until_ready(out)

    eps = 1e-5
    s1 = bn1_gamma / jnp.sqrt(bn1_var + eps)
    b1 = bn1_beta - bn1_mean * s1
    s2 = bn2_gamma / jnp.sqrt(bn2_var + eps)
    b2 = bn2_beta - bn2_mean * s2
    ref = _reference(x, dw_w, pw_w, s1, b1, s2, b2, K)
    assert out.shape == (N, Cout, L)
    assert jnp.allclose(out, ref, atol=1e-4, rtol=1e-4), "mismatch vs reference"

    print("KERNEL_OK")
</pallas_src>

<mosaic_0001>
module attributes {stable_mosaic.version = 11 : i64} {
  func.func @_dwsep_kernel(%arg0: i32, %arg1: memref<2x4x16xf32, #tpu.memory_space<vmem>>, %arg2: memref<4x3xf32, #tpu.memory_space<vmem>>, %arg3: memref<8x4xf32, #tpu.memory_space<vmem>>, %arg4: memref<4x1xf32, #tpu.memory_space<vmem>>, %arg5: memref<8x1xf32, #tpu.memory_space<vmem>>, %arg6: memref<2x8x16xf32, #tpu.memory_space<vmem>>, %arg7: memref<2x4x18xf32, #tpu.memory_space<vmem>>) attributes {dimension_semantics = [#tpu.dimension_semantics<parallel>], iteration_bounds = array<i64: 1>, scalar_prefetch = 0 : i64, scratch_operands = 1 : i64, tpu.core_type = #tpu.core_type<tc>, window_params = [{transform_indices = @transform_0, window_bounds = array<i64: 2, 4, 16>}, {pipeline_mode = #tpu.pipeline_mode<synchronous>, transform_indices = @transform_1, window_bounds = array<i64: 4, 3>}, {pipeline_mode = #tpu.pipeline_mode<synchronous>, transform_indices = @transform_2, window_bounds = array<i64: 8, 4>}, {pipeline_mode = #tpu.pipeline_mode<synchronous>, transform_indices = @transform_3, window_bounds = array<i64: 4, 1>}, {pipeline_mode = #tpu.pipeline_mode<synchronous>, transform_indices = @transform_4, window_bounds = array<i64: 8, 1>}, {transform_indices = @transform_5, window_bounds = array<i64: 2, 8, 16>}]} {
    %cst = arith.constant 0.000000e+00 : f32
    %0 = vector.broadcast %cst : f32 to vector<2x4x1xf32>
    %c0 = arith.constant 0 : index
    %c0_0 = arith.constant 0 : index
    %c0_1 = arith.constant 0 : index
    %1 = vector.load %arg7[%c0, %c0_0, %c0_1] : memref<2x4x18xf32, #tpu.memory_space<vmem>>, vector<2x4x1xf32>
    tpu.vector_store %arg7[%c0, %c0_0, %c0_1], %0 {strides = array<i32>} : memref<2x4x18xf32, #tpu.memory_space<vmem>>, vector<2x4x1xf32>,
    %c0_2 = arith.constant 0 : index
    %c0_3 = arith.constant 0 : index
    %c17 = arith.constant 17 : index
    %2 = vector.load %arg7[%c0_2, %c0_3, %c17] : memref<2x4x18xf32, #tpu.memory_space<vmem>>, vector<2x4x1xf32>
    tpu.vector_store %arg7[%c0_2, %c0_3, %c17], %0 {strides = array<i32>} : memref<2x4x18xf32, #tpu.memory_space<vmem>>, vector<2x4x1xf32>,
    %c0_4 = arith.constant 0 : index
    %c0_5 = arith.constant 0 : index
    %c0_6 = arith.constant 0 : index
    %3 = vector.load %arg1[%c0_4, %c0_5, %c0_6] : memref<2x4x16xf32, #tpu.memory_space<vmem>>, vector<2x4x16xf32>
    %c0_7 = arith.constant 0 : index
    %c0_8 = arith.constant 0 : index
    %c1 = arith.constant 1 : index
    %4 = vector.load %arg7[%c0_7, %c0_8, %c1] : memref<2x4x18xf32, #tpu.memory_space<vmem>>, vector<2x4x16xf32>
    tpu.vector_store %arg7[%c0_7, %c0_8, %c1], %3 {strides = array<i32>} : memref<2x4x18xf32, #tpu.memory_space<vmem>>, vector<2x4x16xf32>,
    %c0_9 = arith.constant 0 : index
    %c0_10 = arith.constant 0 : index
    %c0_11 = arith.constant 0 : index
    %5 = vector.load %arg7[%c0_9, %c0_10, %c0_11] : memref<2x4x18xf32, #tpu.memory_space<vmem>>, vector<2x4x18xf32>
    %c0_12 = arith.constant 0 : index
    %c0_13 = arith.constant 0 : index
    %6 = vector.load %arg2[%c0_12, %c0_13] : memref<4x3xf32, #tpu.memory_space<vmem>>, vector<4x3xf32>
    %cst_14 = arith.constant 0.000000e+00 : f32
    %7 = vector.broadcast %cst_14 : f32 to vector<2x4x16xf32>
    %8 = vector.extract_strided_slice %5 {offsets = [0, 0, 0], sizes = [2, 4, 16], strides = [1, 1, 1]} : vector<2x4x18xf32> to vector<2x4x16xf32>
    %9 = vector.extract_strided_slice %6 {offsets = [0, 0], sizes = [4, 1], strides = [1, 1]} : vector<4x3xf32> to vector<4x1xf32>
    %10 = vector.shape_cast %9 : vector<4x1xf32> to vector<1x4x1xf32>
    %11 = vector.broadcast %10 : vector<1x4x1xf32> to vector<2x4x16xf32>
    %12 = arith.mulf %8, %11 : vector<2x4x16xf32>
    %13 = arith.addf %7, %12 : vector<2x4x16xf32>
    %14 = vector.extract_strided_slice %5 {offsets = [0, 0, 1], sizes = [2, 4, 16], strides = [1, 1, 1]} : vector<2x4x18xf32> to vector<2x4x16xf32>
    %15 = vector.extract_strided_slice %6 {offsets = [0, 1], sizes = [4, 1], strides = [1, 1]} : vector<4x3xf32> to vector<4x1xf32>
    %16 = vector.shape_cast %15 : vector<4x1xf32> to vector<1x4x1xf32>
    %17 = vector.broadcast %16 : vector<1x4x1xf32> to vector<2x4x16xf32>
    %18 = arith.mulf %14, %17 : vector<2x4x16xf32>
    %19 = arith.addf %13, %18 : vector<2x4x16xf32>
    %20 = vector.extract_strided_slice %5 {offsets = [0, 0, 2], sizes = [2, 4, 16], strides = [1, 1, 1]} : vector<2x4x18xf32> to vector<2x4x16xf32>
    %21 = vector.extract_strided_slice %6 {offsets = [0, 2], sizes = [4, 1], strides = [1, 1]} : vector<4x3xf32> to vector<4x1xf32>
    %22 = vector.shape_cast %21 : vector<4x1xf32> to vector<1x4x1xf32>
    %23 = vector.broadcast %22 : vector<1x4x1xf32> to vector<2x4x16xf32>
    %24 = arith.mulf %20, %23 : vector<2x4x16xf32>
    %25 = arith.addf %19, %24 : vector<2x4x16xf32>
    %c0_15 = arith.constant 0 : index
    %c0_16 = arith.constant 0 : index
    %26 = vector.load %arg4[%c0_15, %c0_16] : memref<4x1xf32, #tpu.memory_space<vmem>>, vector<4x1xf32>
    %27 = vector.shape_cast %26 : vector<4x1xf32> to vector<1x4x1xf32>
    %28 = vector.broadcast %27 : vector<1x4x1xf32> to vector<2x4x16xf32>
    %29 = arith.addf %25, %28 : vector<2x4x16xf32>
    %cst_17 = arith.constant 0.000000e+00 : f32
    %30 = vector.broadcast %cst_17 : f32 to vector<2x4x16xf32>
    %31 = arith.cmpf oge, %29, %30 : vector<2x4x16xf32>
    %cst_18 = arith.constant 0.00999999977 : f32
    %32 = vector.broadcast %cst_18 : f32 to vector<2x4x16xf32>
    %33 = arith.mulf %32, %29 : vector<2x4x16xf32>
    %34 = arith.select %31, %29, %33 : vector<2x4x16xi1>, vector<2x4x16xf32>
    %c0_19 = arith.constant 0 : index
    %c0_20 = arith.constant 0 : index
    %35 = vector.load %arg3[%c0_19, %c0_20] : memref<8x4xf32, #tpu.memory_space<vmem>>, vector<8x4xf32>
    %c0_21 = arith.constant 0 : index
    %c0_22 = arith.constant 0 : index
    %36 = vector.load %arg5[%c0_21, %c0_22] : memref<8x1xf32, #tpu.memory_space<vmem>>, vector<8x1xf32>
    %37 = vector.extract_strided_slice %34 {offsets = [0, 0, 0], sizes = [1, 4, 16], strides = [1, 1, 1]} : vector<2x4x16xf32> to vector<1x4x16xf32>
    %38 = vector.shape_cast %37 : vector<1x4x16xf32> to vector<4x16xf32>
    %cst_23 = arith.constant dense<0.000000e+00> : vector<8x16xf32>
    %39 = tpu.matmul %35, %38, %cst_23 {dimension_numbers = #tpu.dot_dimension_numbers<[1], [0], [0], [1], [0, 0, 1, 1], [], []>} : vector<8x4xf32>, vector<4x16xf32>, vector<8x16xf32> -> vector<8x16xf32>
    %40 = vector.broadcast %36 : vector<8x1xf32> to vector<8x16xf32>
    %41 = arith.addf %39, %40 : vector<8x16xf32>
    %cst_24 = arith.constant 0.000000e+00 : f32
    %42 = vector.broadcast %cst_24 : f32 to vector<8x16xf32>
    %43 = arith.cmpf oge, %41, %42 : vector<8x16xf32>
    %cst_25 = arith.constant 0.00999999977 : f32
    %44 = vector.broadcast %cst_25 : f32 to vector<8x16xf32>
    %45 = arith.mulf %44, %41 : vector<8x16xf32>
    %46 = arith.select %43, %41, %45 : vector<8x16xi1>, vector<8x16xf32>
    %c0_26 = arith.constant 0 : index
    %c0_27 = arith.constant 0 : index
    %c0_28 = arith.constant 0 : index
    %47 = vector.load %arg6[%c0_26, %c0_27, %c0_28] : memref<2x8x16xf32, #tpu.memory_space<vmem>>, vector<1x8x16xf32>
    %48 = vector.shape_cast %47 : vector<1x8x16xf32> to vector<8x16xf32>
    %49 = vector.shape_cast %46 : vector<8x16xf32> to vector<1x8x16xf32>
    tpu.vector_store %arg6[%c0_26, %c0_27, %c0_28], %49 {strides = array<i32>} : memref<2x8x16xf32, #tpu.memory_space<vmem>>, vector<1x8x16xf32>,
    %50 = vector.extract_strided_slice %34 {offsets = [1, 0, 0], sizes = [1, 4, 16], strides = [1, 1, 1]} : vector<2x4x16xf32> to vector<1x4x16xf32>
    %51 = vector.shape_cast %50 : vector<1x4x16xf32> to vector<4x16xf32>
    %cst_29 = arith.constant dense<0.000000e+00> : vector<8x16xf32>
    %52 = tpu.matmul %35, %51, %cst_29 {dimension_numbers = #tpu.dot_dimension_numbers<[1], [0], [0], [1], [0, 0, 1, 1], [], []>} : vector<8x4xf32>, vector<4x16xf32>, vector<8x16xf32> -> vector<8x16xf32>
    %53 = vector.broadcast %36 : vector<8x1xf32> to vector<8x16xf32>
    %54 = arith.addf %52, %53 : vector<8x16xf32>
    %cst_30 = arith.constant 0.000000e+00 : f32
    %55 = vector.broadcast %cst_30 : f32 to vector<8x16xf32>
    %56 = arith.cmpf oge, %54, %55 : vector<8x16xf32>
    %cst_31 = arith.constant 0.00999999977 : f32
    %57 = vector.broadcast %cst_31 : f32 to vector<8x16xf32>
    %58 = arith.mulf %57, %54 : vector<8x16xf32>
    %59 = arith.select %56, %54, %58 : vector<8x16xi1>, vector<8x16xf32>
    %c1_32 = arith.constant 1 : index
    %c0_33 = arith.constant 0 : index
    %c0_34 = arith.constant 0 : index
    %60 = vector.load %arg6[%c1_32, %c0_33, %c0_34] : memref<2x8x16xf32, #tpu.memory_space<vmem>>, vector<1x8x16xf32>
    %61 = vector.shape_cast %60 : vector<1x8x16xf32> to vector<8x16xf32>
    %62 = vector.shape_cast %59 : vector<8x16xf32> to vector<1x8x16xf32>
    tpu.vector_store %arg6[%c1_32, %c0_33, %c0_34], %62 {strides = array<i32>} : memref<2x8x16xf32, #tpu.memory_space<vmem>>, vector<1x8x16xf32>,
    return
  }
  func.func @transform_0(%arg0: i32) -> (i32, i32, i32) {
    %c0_i32 = arith.constant 0 : i32
    %c0_i32_0 = arith.constant 0 : i32
    %c0_i32_1 = arith.constant 0 : i32
    return %arg0, %c0_i32, %c0_i32_0 : i32, i32, i32
  }
  func.func @transform_1(%arg0: i32) -> (i32, i32) {
    %c0_i32 = arith.constant 0 : i32
    %c0_i32_0 = arith.constant 0 : i32
    %c0_i32_1 = arith.constant 0 : i32
    return %c0_i32, %c0_i32_0 : i32, i32
  }
  func.func @transform_2(%arg0: i32) -> (i32, i32) {
    %c0_i32 = arith.constant 0 : i32
    %c0_i32_0 = arith.constant 0 : i32
    %c0_i32_1 = arith.constant 0 : i32
    return %c0_i32, %c0_i32_0 : i32, i32
  }
  func.func @transform_3(%arg0: i32) -> (i32, i32) {
    %c0_i32 = arith.constant 0 : i32
    %c0_i32_0 = arith.constant 0 : i32
    %c0_i32_1 = arith.constant 0 : i32
    return %c0_i32, %c0_i32_0 : i32, i32
  }
  func.func @transform_4(%arg0: i32) -> (i32, i32) {
    %c0_i32 = arith.constant 0 : i32
    %c0_i32_0 = arith.constant 0 : i32
    %c0_i32_1 = arith.constant 0 : i32
    return %c0_i32, %c0_i32_0 : i32, i32
  }
  func.func @transform_5(%arg0: i32) -> (i32, i32, i32) {
    %c0_i32 = arith.constant 0 : i32
    %c0_i32_0 = arith.constant 0 : i32
    %c0_i32_1 = arith.constant 0 : i32
    return %arg0, %c0_i32, %c0_i32_0 : i32, i32, i32
  }
}

</mosaic_0001>

<bundles_post_ra>
// kernel: tpu_custom_call.1
= control target key start
LH: loop header
LB: loop body
LE: loop exit
PB: predicated region body
PF: predicated region fallthrough
CT: control target
= control target key end

     0   :  { %v229_v2 = vmov 1   ;;  %s230_s22 = smov 1   ;;  %v231_v3 = vmov 0   ;;  %s290_s0 = inlined_call_operand.vmem [shape: f32[2,4,16], index: 0, kind: input, shape index: {}]   ;;  %s291_s1 = inlined_call_operand.vmem [shape: f32[4,3], index: 1, kind: input, shape index: {}]   ;;  %s292_s2 = inlined_call_operand.vmem [shape: f32[8,4], index: 2, kind: input, shape index: {}]   ;;  %s293_s3 = inlined_call_operand.vmem [shape: f32[4,1], index: 3, kind: input, shape index: {}]   ;;  %s294_s4 = inlined_call_operand.vmem [shape: f32[8,1], index: 4, kind: input, shape index: {}]   ;;  %s295_s5 = inlined_call_operand.hbm [shape: f32[2,8,16], index: 5, kind: output, shape index: {}]  }
   0x1   :  { %v27_v0 = vld [vmem:[%s290_s0] sm:$0xf]  ;;  %198 = vset.pattern.permute.xlu1 %v229_v2  ;;  %200 = vset.pattern.permute.xlu2 %v231_v3 }
   0x2   :  { %v42_v1 = vld [vmem:[%s291_s1] sm:$0xf]  ;;  %31 = vrot.lane.b32.xlu0 %v27_v0, %s230_s22 }
   0x3   :  { %53 = vperm.xlu1 %198, %v42_v1  }
   0x4   :  { %10 = vsyncpa [#allocation4], 0  ;;  %45 = vperm.xlu2 %200, %v42_v1   ;;  %201 = vset.pattern.permute.xlu0 %v231_v3  ;;  %v28_v4 = vld [vmem:[%s290_s0 + $0x4] sm:$0xf]  ;;  %v232_v5 = vmov 2   ;;  %vm21_vm0 = vcmask 3072  }
   0x5   :  { %v233_v6 = vmov 0.0   ;;  %vm24_vm1 = vcmask 142472   ;;  %vm37_vm2 = vcmask 134152   ;;  %s234_s0 = smov 127   ;;  %s235_s1 = smov 126   ;;  %v99_v18 = vld [vmem:[%s294_s4] sm:$0xff] }
   0x6   :  { %22 = vst.msk [vmem:[#allocation2] sm:$0xf] %vm21_vm0, %v233_v6  ;;  %v84_v17 = vld [vmem:[%s293_s3] sm:$0xf]  ;;  %vm109_vm3 = vcmask 1043456   ;;  %vm105_vm6 = vcmask 31744  }
   0x7   :  { %25 = vst.msk [vmem:[#allocation2] sm:$0xf] %vm24_vm1, %v233_v6  ;;  %v98_v35 = vld [vmem:[%s292_s2] sm:$0xff]  ;;  %s236_s29 = smov [#allocation3]   ;;  %s172_s8 = sshll.u32 %s295_s5, 4  ;;  %vm136_vm7 = vcmask 130048   ;;  %s173_s8 = int_to_ptr.hbm [resolvable:$true] %s172_s8 }
   0x8   :  { %23 = vst.msk [vmem:[#allocation2 + $0x4] sm:$0xf] %vm21_vm0, %v233_v6  ;;  %s170_s30 = sshll.u32 %s236_s29, 4  ;;  %s237_s2 = smov 128   ;;  %s171_s30 = int_to_ptr.vmem [resolvable:$true] %s170_s30 }
   0x9   :  { %26 = vst.msk [vmem:[#allocation2 + $0x4] sm:$0xf] %vm24_vm1, %v233_v6  ;;  %s238_s9 = smov 8  }
   0xa   :  { %33 = vrot.lane.b32.xlu0 %v28_v4, %s230_s22 }
   0xb   :  { %199 = vset.pattern.permute.xlu1 %v232_v5 }
   0xc   :  { %69 = vperm.xlu1 %199, %v42_v1  }
  0x14   :  { %202 = vset.pattern.permute.xlu1 %v231_v3 }
  0x5e   :  { %v46_v19 = vpop.permute.xlu2 %45 }
  0x74   :  { %v32_v7 = vpop.permute.xlu0 %31 }
  0x75   :  { %38 = vst.msk [vmem:[#allocation2] sm:$0xf] %vm37_vm2, %v32_v7  ;;  %v54_v8 = vpop.permute.xlu1 %53 }
  0x7c   :  { %v40_v9 = vld [vmem:[#allocation2] sm:$0xf]  ;;  %v34_v10 = vpop.permute.xlu0 %33 }
  0x7d   :  { %v56_v11 = vmul.f32 %v54_v8, %v40_v9  ;;  %39 = vst.msk [vmem:[#allocation2 + $0x4] sm:$0xf] %vm37_vm2, %v34_v10  ;;  %v48_v23 = vmul.f32 %v46_v19, %v40_v9 }
  0x7e   :  { %v70_v12 = vpop.permute.xlu1 %69 }
  0x7f   :  { %v72_v13 = vmul.f32 %v70_v12, %v40_v9  ;;  %60 = vrot.lane.b32.xlu2 %v56_v11, %s234_s0 }
  0x81   :  { %76 = vrot.lane.b32.xlu1 %v72_v13, %s235_s1 }
  0x84   :  { %v41_v14 = vld [vmem:[#allocation2 + $0x4] sm:$0xf] }
  0x85   :  { %v73_v15 = vmul.f32 %v70_v12, %v41_v14  ;;  %v57_v16 = vmul.f32 %v54_v8, %v41_v14  ;;  %v49_v22 = vmul.f32 %v46_v19, %v41_v14 }
  0x87   :  { %62 = vrot.lane.b32.xlu0 %v57_v16, %s234_s0  ;;  %78 = vrot.lane.b32.xlu2 %v73_v15, %s235_s1 }
  0x89   :  { %102 = vperm.xlu1 %202, %v99_v18  }
  0x8f   :  { %87 = vperm.xlu0 %201, %v84_v17  }
  0xd9   :  { %v61_v20 = vpop.permute.xlu2 %60 }
  0xda   :  { %v66_v26 = vadd.f32 %v61_v20, %v48_v23 }
  0xe1   :  { %v79_v27 = vpop.permute.xlu2 %78 }
  0xf3   :  { %v77_v25 = vpop.permute.xlu1 %76 }
  0xf4   :  { %v82_v28 = vadd.f32 %v77_v25, %v66_v26 }
  0xf9   :  { %v63_v21 = vpop.permute.xlu0 %62 }
  0xfa   :  { %v67_v24 = vadd.f32 %v63_v21, %v49_v22 }
  0xfb   :  { %v103_v38 = vpop.permute.xlu1 %102 }
  0xfc   :  { %v83_v29 = vadd.f32 %v79_v27, %v67_v24 }
 0x101   :  { %v88_v30 = vpop.permute.xlu0 %87 }
 0x102   :  { %v90_v31 = vadd.f32 %v88_v30, %v82_v28  ;;  %v91_v32 = vadd.f32 %v88_v30, %v83_v29 }
 0x104   :  { %vm92_vm4 = vcmp.ge.f32.partialorder %v90_v31, 0.0  ;;  %v94_v33 = vmul.f32 0.01, %v90_v31  ;;  %vm93_vm5 = vcmp.ge.f32.partialorder %v91_v32, 0.0  ;;  %v95_v34 = vmul.f32 0.01, %v91_v32 }
 0x106   :  { %v96_v36 = vsel %vm92_vm4, %v90_v31, %v94_v33  ;;  %v97_v37 = vsel %vm93_vm5, %v91_v32, %v95_v34 }
 0x107   :  { %184 = vmatpush.msk.msra.mxu0 %vm109_vm3, %v96_v36  ;;  %186 = vmatpush.msk.msra.mxu1 %vm109_vm3, %v97_v37 }
 0x108   :  { %185 = vmatmul.msk.f32.vlgmr.msra.gmra.mxu0 %vm105_vm6, %v98_v35  ;;  %187 = vmatmul.msk.f32.vlgmr.msra.gmra.mxu1 %vm105_vm6, %v98_v35 }
 0x185   :  { %v130_v39 = vpop.f32.mrf.mxu0  ;;  %v158_v40 = vpop.f32.mrf.mxu1 }
 0x186   :  { %v131_v41 = vadd.f32 %v130_v39, %v103_v38  ;;  %v159_v42 = vadd.f32 %v158_v40, %v103_v38 }
 0x188   :  { %vm133_vm8 = vcmp.ge.f32.partialorder %v131_v41, 0.0  ;;  %v134_v43 = vmul.f32 0.01, %v131_v41  ;;  %vm161_vm9 = vcmp.ge.f32.partialorder %v159_v42, 0.0  ;;  %v162_v44 = vmul.f32 0.01, %v159_v42 }
 0x18a   :  { %v135_v45 = vsel %vm133_vm8, %v131_v41, %v134_v43  ;;  %v163_v46 = vsel %vm161_vm9, %v159_v42, %v162_v44 }
 0x18b   :  { %137 = vst.msk [vmem:[#allocation3] sm:$0xff] %vm136_vm7, %v135_v45 }
 0x18c   :  { %165 = vst.msk [vmem:[#allocation3 + $0x8] sm:$0xff] %vm136_vm7, %v163_v46 }
 0x18d   :  { %178 = dma.vmem_to_hbm [thread:$0]  %s171_s30, 256, %s173_s8, [#allocation4], %s237_s2, %s237_s2, %s238_s9  }
 0x18e   :  { %227 = dma.done.wait [#allocation4], 256  }
 0x18f   :  { %228 = vsyncadd [#allocation4], 4294967040 }
 0x190   :  { %183 = vsyncpa [#allocation4], 1 }

</bundles_post_ra>
